<compile_context>
chip_gen: v5e
topology: v5e:2x2
jax: 0.10.0
libtpu: 0.0.40
codegen_flags: <defaults>
</compile_context>

<pallas_src>
import functools

import jax
import jax.numpy as jnp
from jax import lax
from jax.experimental import pallas as pl
from jax.experimental.pallas import tpu as pltpu


LN_EPS = 1e-5


def _round_up(a: int, b: int) -> int:
    return (a + b - 1) // b * b


def _prenorm_residual_kernel(x_ref, gamma_ref, beta_ref, w_ref, b_ref, o_ref,
                             *, true_d: int, col_tile: int):
    # x_ref:     (TR, Dp)       tile of rows (full padded feature width)
    # gamma_ref: (1, Dp)        LayerNorm weight (zero-padded)
    # beta_ref:  (1, Dp)        LayerNorm bias   (zero-padded)
    # w_ref:     (TN, Dp)       Linear weight tile, PyTorch (out, in) layout
    # b_ref:     (1, TN)        Linear bias tile
    # o_ref:     (TR, TN)       output tile
    j = pl.program_id(1)

    x = x_ref[...].astype(jnp.float32)                       # (TR, Dp)

    # LayerNorm statistics over the TRUE feature dim (padding lanes are zero,
    # so plain sums are exact; divide by true_d, not the padded width).
    inv_d = jnp.float32(1.0 / true_d)
    s = jnp.sum(x, axis=-1, keepdims=True)
    ss = jnp.sum(x * x, axis=-1, keepdims=True)
    mu = s * inv_d
    var = jnp.maximum(ss * inv_d - mu * mu, 0.0)
    xn = (x - mu) * lax.rsqrt(var + LN_EPS)
    ln = xn * gamma_ref[...].astype(jnp.float32) + beta_ref[...].astype(jnp.float32)

    # Matmul on the MXU in the weight's native dtype (bf16 weights -> bf16 MXU
    # inputs), f32 accumulation.  Contraction is ln @ W^T without transposing
    # the weight in the wrapper.
    ln = ln.astype(w_ref.dtype)
    y = lax.dot_general(ln, w_ref[...],
                        dimension_numbers=(((1,), (1,)), ((), ())),
                        preferred_element_type=jnp.float32)   # (TR, TN)

    # Residual + bias (bias rides on the same VPU add).
    col0 = pl.multiple_of(j * col_tile, 128)
    x_res = x_ref[:, pl.ds(col0, col_tile)].astype(jnp.float32)
    o_ref[...] = (y + b_ref[...].astype(jnp.float32) + x_res).astype(o_ref.dtype)


def prenorm_residual(x, gamma, beta, w, b, *, row_tile=None, col_tile=None):
    """PreNormResidual with fn = Linear(D, D).

    x: (..., D).  gamma/beta/b: (D,).  w: (D, D) in PyTorch (out, in) layout.
    """
    *lead, D = x.shape
    R = 1
    for d in lead:
        R *= d

    # --- tiling / padding decisions ------------------------------------------
    D_pad = _round_up(D, 128)                          # lane-dense last dim
    if row_tile is None:
        row_tile = min(512, _round_up(max(R, 8), 8))   # big tiles, >=8 rows
    row_tile = _round_up(row_tile, 8)
    R_pad = _round_up(R, row_tile)

    w_itemsize = jnp.dtype(w.dtype).itemsize
    x_itemsize = jnp.dtype(x.dtype).itemsize
    if col_tile is None:
        # Keep the resident weight tile <= ~8 MiB so it fits VMEM (incl. v7x)
        # even with double buffering and big row tiles.
        max_w_tile_bytes = 8 * 1024 * 1024
        candidates = [c for c in range(128, D_pad + 1, 128) if D_pad % c == 0]
        fitting = [c for c in candidates if c * D_pad * w_itemsize <= max_w_tile_bytes]
        col_tile = max(fitting) if fitting else 128
    assert D_pad % col_tile == 0 and col_tile % 128 == 0

    # --- zero-pad operands (padding is mathematically inert, sliced off) -----
    x2 = x.reshape(R, D)
    if (R_pad, D_pad) != (R, D):
        x2 = jnp.pad(x2, ((0, R_pad - R), (0, D_pad - D)))
    gamma2 = jnp.pad(gamma, (0, D_pad - D)).reshape(1, D_pad)
    beta2 = jnp.pad(beta, (0, D_pad - D)).reshape(1, D_pad)
    b2 = jnp.pad(b, (0, D_pad - D)).reshape(1, D_pad)
    w2 = jnp.pad(w, ((0, D_pad - D), (0, D_pad - D)))   # (out, in) layout kept

    grid = (R_pad // row_tile, D_pad // col_tile)

    # --- scheduler / VMEM hints ----------------------------------------------
    cost = pl.CostEstimate(
        flops=2 * R_pad * D_pad * D_pad,
        transcendentals=0,
        bytes_accessed=2 * R_pad * D_pad * x_itemsize + D_pad * D_pad * w_itemsize,
    )
    need = 2 * (row_tile * D_pad * x_itemsize          # x tile (double-buffered)
                + row_tile * col_tile * x_itemsize     # out tile
                + col_tile * D_pad * w_itemsize)       # weight tile
    need += 4 * D_pad * 4                              # gamma/beta/bias
    vmem_limit = int(min(max(2 * need, 32 * 1024 * 1024), 64 * 1024 * 1024))

    kernel = functools.partial(_prenorm_residual_kernel,
                               true_d=D, col_tile=col_tile)

    out = pl.pallas_call(
        kernel,
        out_shape=jax.ShapeDtypeStruct((R_pad, D_pad), x.dtype),
        grid_spec=pltpu.PrefetchScalarGridSpec(
            num_scalar_prefetch=0,
            grid=grid,
            in_specs=[
                pl.BlockSpec((row_tile, D_pad), lambda i, j: (i, 0)),   # x rows
                pl.BlockSpec((1, D_pad), lambda i, j: (0, 0)),          # gamma
                pl.BlockSpec((1, D_pad), lambda i, j: (0, 0)),          # beta
                pl.BlockSpec((col_tile, D_pad), lambda i, j: (j, 0)),   # W (out,in)
                pl.BlockSpec((1, col_tile), lambda i, j: (0, j)),       # bias
            ],
            out_specs=pl.BlockSpec((row_tile, col_tile), lambda i, j: (i, j)),
        ),
        compiler_params=pltpu.CompilerParams(
            dimension_semantics=("parallel", "parallel"),
            vmem_limit_bytes=vmem_limit,
        ),
        cost_estimate=cost,
    )(x2, gamma2, beta2, w2, b2)

    return out[:R, :D].reshape(*lead, D)


if __name__ == "__main__":
    B, N, D = 2, 8, 32

    key = jax.random.PRNGKey(0)
    kx, kw, kb = jax.random.split(key, 3)

    x = jax.random.normal(kx, (B, N, D), dtype=jnp.float32)

    # LayerNorm params: PyTorch default init (weight=1, bias=0)
    gamma = jnp.ones((D,), dtype=jnp.float32)
    beta = jnp.zeros((D,), dtype=jnp.float32)

    # fn = Linear(D, D): deterministic init, PyTorch (out, in) layout
    bound = 1.0 / (D ** 0.5)
    w = jax.random.uniform(kw, (D, D), minval=-bound, maxval=bound,
                           dtype=jnp.float32)
    b = jax.random.uniform(kb, (D,), minval=-bound, maxval=bound,
                           dtype=jnp.float32)

    out = prenorm_residual(x, gamma, beta, w, b)
    out = jax.block_until_ready(out)

    # sanity check against a pure-JAX reference
    mu = jnp.mean(x, axis=-1, keepdims=True)
    var = jnp.mean((x - mu) ** 2, axis=-1, keepdims=True)
    ln = (x - mu) / jnp.sqrt(var + LN_EPS) * gamma + beta
    ref = jnp.einsum("bnd,od->bno", ln, w) + b + x
    assert jnp.allclose(out, ref, atol=1e-4, rtol=1e-4), "mismatch vs reference"

    print("KERNEL_OK")
</pallas_src>

<mosaic_0001>
module attributes {stable_mosaic.version = 11 : i64} {
  func.func @_prenorm_residual_kernel(%arg0: i32, %arg1: i32, %arg2: memref<16x128xf32, #tpu.memory_space<vmem>>, %arg3: memref<1x128xf32, #tpu.memory_space<vmem>>, %arg4: memref<1x128xf32, #tpu.memory_space<vmem>>, %arg5: memref<128x128xf32, #tpu.memory_space<vmem>>, %arg6: memref<1x128xf32, #tpu.memory_space<vmem>>, %arg7: memref<16x128xf32, #tpu.memory_space<vmem>>) attributes {dimension_semantics = [#tpu.dimension_semantics<parallel>, #tpu.dimension_semantics<parallel>], iteration_bounds = array<i64: 1, 1>, scalar_prefetch = 0 : i64, scratch_operands = 0 : i64, tpu.core_type = #tpu.core_type<tc>, window_params = [{transform_indices = @transform_0, window_bounds = array<i64: 16, 128>}, {pipeline_mode = #tpu.pipeline_mode<synchronous>, transform_indices = @transform_1, window_bounds = array<i64: 1, 128>}, {pipeline_mode = #tpu.pipeline_mode<synchronous>, transform_indices = @transform_2, window_bounds = array<i64: 1, 128>}, {transform_indices = @transform_3, window_bounds = array<i64: 128, 128>}, {transform_indices = @transform_4, window_bounds = array<i64: 1, 128>}, {transform_indices = @transform_5, window_bounds = array<i64: 16, 128>}]} {
    %c0 = arith.constant 0 : index
    %c0_0 = arith.constant 0 : index
    %0 = vector.load %arg2[%c0, %c0_0] : memref<16x128xf32, #tpu.memory_space<vmem>>, vector<16x128xf32>
    %cst = arith.constant dense<0.000000e+00> : vector<16xf32>
    %1 = vector.multi_reduction <add>, %0, %cst [1] : vector<16x128xf32> to vector<16xf32>
    %2 = vector.shape_cast %1 : vector<16xf32> to vector<16x1xf32>
    %3 = arith.mulf %0, %0 : vector<16x128xf32>
    %cst_1 = arith.constant dense<0.000000e+00> : vector<16xf32>
    %4 = vector.multi_reduction <add>, %3, %cst_1 [1] : vector<16x128xf32> to vector<16xf32>
    %5 = vector.shape_cast %4 : vector<16xf32> to vector<16x1xf32>
    %cst_2 = arith.constant 3.125000e-02 : f32
    %6 = vector.broadcast %cst_2 : f32 to vector<16x1xf32>
    %7 = arith.mulf %2, %6 : vector<16x1xf32>
    %cst_3 = arith.constant 3.125000e-02 : f32
    %8 = vector.broadcast %cst_3 : f32 to vector<16x1xf32>
    %9 = arith.mulf %5, %8 : vector<16x1xf32>
    %10 = arith.mulf %7, %7 : vector<16x1xf32>
    %11 = arith.subf %9, %10 : vector<16x1xf32>
    %cst_4 = arith.constant 0.000000e+00 : f32
    %12 = vector.broadcast %cst_4 : f32 to vector<16x1xf32>
    %13 = arith.maximumf %11, %12 : vector<16x1xf32>
    %14 = vector.broadcast %7 : vector<16x1xf32> to vector<16x128xf32>
    %15 = arith.subf %0, %14 : vector<16x128xf32>
    %cst_5 = arith.constant 9.99999974E-6 : f32
    %16 = vector.broadcast %cst_5 : f32 to vector<16x1xf32>
    %17 = arith.addf %13, %16 : vector<16x1xf32>
    %18 = math.rsqrt %17 : vector<16x1xf32>
    %19 = vector.broadcast %18 : vector<16x1xf32> to vector<16x128xf32>
    %20 = arith.mulf %15, %19 : vector<16x128xf32>
    %c0_6 = arith.constant 0 : index
    %c0_7 = arith.constant 0 : index
    %21 = vector.load %arg3[%c0_6, %c0_7] : memref<1x128xf32, #tpu.memory_space<vmem>>, vector<1x128xf32>
    %22 = vector.broadcast %21 : vector<1x128xf32> to vector<16x128xf32>
    %23 = arith.mulf %20, %22 : vector<16x128xf32>
    %c0_8 = arith.constant 0 : index
    %c0_9 = arith.constant 0 : index
    %24 = vector.load %arg4[%c0_8, %c0_9] : memref<1x128xf32, #tpu.memory_space<vmem>>, vector<1x128xf32>
    %25 = vector.broadcast %24 : vector<1x128xf32> to vector<16x128xf32>
    %26 = arith.addf %23, %25 : vector<16x128xf32>
    %c0_10 = arith.constant 0 : index
    %c0_11 = arith.constant 0 : index
    %27 = vector.load %arg5[%c0_10, %c0_11] : memref<128x128xf32, #tpu.memory_space<vmem>>, vector<128x128xf32>
    %cst_12 = arith.constant dense<0.000000e+00> : vector<16x128xf32>
    %28 = tpu.matmul %26, %27, %cst_12 {dimension_numbers = #tpu.dot_dimension_numbers<[1], [1], [0], [0], [0, 0, 1, 0], [], []>} : vector<16x128xf32>, vector<128x128xf32>, vector<16x128xf32> -> vector<16x128xf32>
    %c128_i32 = arith.constant 128 : i32
    %29 = arith.muli %arg1, %c128_i32 : i32
    %30 = tpu.assume_multiple %29, 128 : i32
    %c0_13 = arith.constant 0 : index
    %31 = arith.index_cast %30 : i32 to index
    %32 = vector.load %arg2[%c0_13, %31] : memref<16x128xf32, #tpu.memory_space<vmem>>, vector<16x128xf32>
    %c0_14 = arith.constant 0 : index
    %c0_15 = arith.constant 0 : index
    %33 = vector.load %arg6[%c0_14, %c0_15] : memref<1x128xf32, #tpu.memory_space<vmem>>, vector<1x128xf32>
    %34 = vector.broadcast %33 : vector<1x128xf32> to vector<16x128xf32>
    %35 = arith.addf %28, %34 : vector<16x128xf32>
    %36 = arith.addf %35, %32 : vector<16x128xf32>
    %c0_16 = arith.constant 0 : index
    %c0_17 = arith.constant 0 : index
    %37 = vector.load %arg7[%c0_16, %c0_17] : memref<16x128xf32, #tpu.memory_space<vmem>>, vector<16x128xf32>
    tpu.vector_store %arg7[%c0_16, %c0_17], %36 {strides = array<i32>} : memref<16x128xf32, #tpu.memory_space<vmem>>, vector<16x128xf32>,
    return
  }
  func.func @transform_0(%arg0: i32, %arg1: i32) -> (i32, i32) {
    %c0_i32 = arith.constant 0 : i32
    %c0_i32_0 = arith.constant 0 : i32
    return %arg0, %c0_i32 : i32, i32
  }
  func.func @transform_1(%arg0: i32, %arg1: i32) -> (i32, i32) {
    %c0_i32 = arith.constant 0 : i32
    %c0_i32_0 = arith.constant 0 : i32
    %c0_i32_1 = arith.constant 0 : i32
    return %c0_i32, %c0_i32_0 : i32, i32
  }
  func.func @transform_2(%arg0: i32, %arg1: i32) -> (i32, i32) {
    %c0_i32 = arith.constant 0 : i32
    %c0_i32_0 = arith.constant 0 : i32
    %c0_i32_1 = arith.constant 0 : i32
    return %c0_i32, %c0_i32_0 : i32, i32
  }
  func.func @transform_3(%arg0: i32, %arg1: i32) -> (i32, i32) {
    %c0_i32 = arith.constant 0 : i32
    %c0_i32_0 = arith.constant 0 : i32
    return %arg1, %c0_i32 : i32, i32
  }
  func.func @transform_4(%arg0: i32, %arg1: i32) -> (i32, i32) {
    %c0_i32 = arith.constant 0 : i32
    %c0_i32_0 = arith.constant 0 : i32
    return %c0_i32, %arg1 : i32, i32
  }
  func.func @transform_5(%arg0: i32, %arg1: i32) -> (i32, i32) {
    %c0_i32 = arith.constant 0 : i32
    return %arg0, %arg1 : i32, i32
  }
}

</mosaic_0001>

<bundles_post_ra>
// kernel: tpu_custom_call.1
= control target key start
LH: loop header
LB: loop body
LE: loop exit
PB: predicated region body
PF: predicated region fallthrough
CT: control target
= control target key end

     0   :  { %10 = vsyncpa [#allocation3], 0  ;;  %s408_s0 = inlined_call_operand.hbm [shape: f32[16,128], index: 0, kind: input, shape index: {}]   ;;  %s409_s1 = inlined_call_operand.hbm [shape: f32[1,128], index: 1, kind: input, shape index: {}]   ;;  %s410_s2 = inlined_call_operand.vmem [shape: f32[1,128], index: 2, kind: input, shape index: {}]   ;;  %s411_s3 = inlined_call_operand.hbm [shape: f32[128,128], index: 3, kind: input, shape index: {}]   ;;  %s412_s4 = inlined_call_operand.vmem [shape: f32[1,128], index: 4, kind: input, shape index: {}]   ;;  %s413_s5 = inlined_call_operand.hbm [shape: f32[16,128], index: 5, kind: output, shape index: {}]  }
   0x1   :  { %11 = vsyncpa [#allocation6], 0  ;;  %s31_s20 = sshll.u32 %s409_s1, 4  ;;  %s32_s20 = int_to_ptr.hbm [resolvable:$true] %s31_s20 }
   0x2   :  { %12 = vsyncpa [#allocation4], 0  ;;  %s331_s21 = smov [#allocation5]   ;;  %s17_s25 = sshll.u32 %s408_s0, 4  ;;  %s18_s25 = int_to_ptr.hbm [resolvable:$true] %s17_s25 }
   0x3   :  { %s33_s22 = sshll.u32 %s331_s21, 4  ;;  %s332_s26 = smov [#allocation2]   ;;  %s34_s22 = int_to_ptr.vmem [resolvable:$true] %s33_s22 }
   0x4   :  { %36 = dma.hbm_to_vmem [thread:$0]  %s32_s20, 16, %s34_s22, [#allocation6]  }
   0x5   :  { %s19_s27 = sshll.u32 %s332_s26, 4  ;;  %s333_s28 = smov 128   ;;  %s20_s27 = int_to_ptr.vmem [resolvable:$true] %s19_s27 }
   0x6   :  { %s334_s29 = smov 8   ;;  %s43_s6 = sshll.u32 %s411_s3, 4  ;;  %s44_s6 = int_to_ptr.hbm [resolvable:$true] %s43_s6 }
   0x7   :  { %25 = dma.hbm_to_vmem [thread:$0]  %s18_s25, 256, %s20_s27, [#allocation3], %s333_s28, %s333_s28, %s334_s29  }
   0x8   :  { %s335_s7 = smov [#allocation7]  }
   0x9   :  { %s45_s8 = sshll.u32 %s335_s7, 4  ;;  %s46_s8 = int_to_ptr.vmem [resolvable:$true] %s45_s8 }
   0xa   :  { %51 = dma.hbm_to_vmem [thread:$0]  %s44_s6, 2048, %s46_s8, [#allocation6], %s333_s28, %s333_s28, %s334_s29  }
   0xb   :  { %325 = dma.done.wait [#allocation3], 256  }
   0xc   :  { %326 = vsyncadd [#allocation3], 4294967040 }
   0xd   :  { %327 = dma.done.wait [#allocation6], 2064  }
   0xe   :  { %328 = vsyncadd [#allocation6], 4294965232  ;;  %v382_v0 = vld [vmem:[#allocation2] sm:$0xff]  ;;  %v141_v1 = vld [vmem:[#allocation7 + $0x78] sm:$0xff]  ;;  %s185_s14 = sshll.u32 %s413_s5, 4  ;;  %s186_s14 = int_to_ptr.hbm [resolvable:$true] %s185_s14 }
   0xf   :  { %68 = vadd.xlane.f32.xlu0 %v382_v0  ;;  %v72_v2 = vmul.f32 %v382_v0, %v382_v0  ;;  %152 = vmatpush.xpose.msra.mxu0 %v141_v1  ;;  %v140_v3 = vld [vmem:[#allocation7 + $0x70] sm:$0xff]  ;;  %v139_v5 = vld [vmem:[#allocation7 + $0x68] sm:$0xff]  ;;  %v138_v7 = vld [vmem:[#allocation7 + $0x60] sm:$0xff] }
  0x10   :  { %200 = vmatpush.xpose.msra.mxu1 %v141_v1  ;;  %v387_v4 = vld [vmem:[#allocation2 + $0x8] sm:$0xff]  ;;  %v135_v10 = vld [vmem:[#allocation7 + $0x48] sm:$0xff]  ;;  %v134_v11 = vld [vmem:[#allocation7 + $0x40] sm:$0xff] }
  0x11   :  { %74 = vadd.xlane.f32.xlu1 %v72_v2  ;;  %v73_v6 = vmul.f32 %v387_v4, %v387_v4  ;;  %v137_v8 = vld [vmem:[#allocation7 + $0x58] sm:$0xff]  ;;  %v136_v9 = vld [vmem:[#allocation7 + $0x50] sm:$0xff]  ;;  %v131_v14 = vld [vmem:[#allocation7 + $0x28] sm:$0xff] }
  0x12   :  { %v133_v12 = vld [vmem:[#allocation7 + $0x38] sm:$0xff]  ;;  %v132_v13 = vld [vmem:[#allocation7 + $0x30] sm:$0xff]  ;;  %v130_v15 = vld [vmem:[#allocation7 + $0x20] sm:$0xff] }
  0x13   :  { %153 = vmatpush.xpose.msra.mxu0 %v140_v3  ;;  %v129_v16 = vld [vmem:[#allocation7 + $0x18] sm:$0xff]  ;;  %v128_v17 = vld [vmem:[#allocation7 + $0x10] sm:$0xff]  ;;  %v127_v18 = vld [vmem:[#allocation7 + $0x8] sm:$0xff] }
  0x14   :  { %201 = vmatpush.xpose.msra.mxu1 %v140_v3  ;;  %v126_v20 = vld [vmem:[#allocation7] sm:$0xff]  ;;  %v222_v45 = vld [vmem:[#allocation5] ss:$0 sm:$0xff]  ;;  %v223_v49 = vld [vmem:[%s410_s2] ss:$0 sm:$0xff]  ;;  %s336_s2 = smov [#allocation8]  }
  0x15   :  { %v224_v60 = vld [vmem:[%s412_s4] ss:$0 sm:$0xff]  ;;  %s183_s11 = sshll.u32 %s336_s2, 4  ;;  %s184_s11 = int_to_ptr.vmem [resolvable:$true] %s183_s11 }
  0x17   :  { %70 = vadd.xlane.f32.xlu0 %v387_v4  ;;  %154 = vmatpush.xpose.msra.mxu0 %v139_v5 }
  0x18   :  { %202 = vmatpush.xpose.msra.mxu1 %v139_v5 }
  0x19   :  { %76 = vadd.xlane.f32.xlu1 %v73_v6 }
  0x1b   :  { %155 = vmatpush.xpose.msra.mxu0 %v138_v7 }
  0x1c   :  { %203 = vmatpush.xpose.msra.mxu1 %v138_v7 }
  0x1f   :  { %156 = vmatpush.xpose.msra.mxu0 %v137_v8 }
  0x20   :  { %204 = vmatpush.xpose.msra.mxu1 %v137_v8 }
  0x23   :  { %157 = vmatpush.xpose.msra.mxu0 %v136_v9 }
  0x24   :  { %205 = vmatpush.xpose.msra.mxu1 %v136_v9 }
  0x27   :  { %158 = vmatpush.xpose.msra.mxu0 %v135_v10 }
  0x28   :  { %206 = vmatpush.xpose.msra.mxu1 %v135_v10 }
  0x2b   :  { %159 = vmatpush.xpose.msra.mxu0 %v134_v11 }
  0x2c   :  { %207 = vmatpush.xpose.msra.mxu1 %v134_v11 }
  0x2f   :  { %160 = vmatpush.xpose.msra.mxu0 %v133_v12 }
  0x30   :  { %208 = vmatpush.xpose.msra.mxu1 %v133_v12 }
  0x33   :  { %161 = vmatpush.xpose.msra.mxu0 %v132_v13 }
  0x34   :  { %209 = vmatpush.xpose.msra.mxu1 %v132_v13 }
  0x37   :  { %162 = vmatpush.xpose.msra.mxu0 %v131_v14 }
  0x38   :  { %210 = vmatpush.xpose.msra.mxu1 %v131_v14 }
  0x3b   :  { %163 = vmatpush.xpose.msra.mxu0 %v130_v15 }
  0x3c   :  { %211 = vmatpush.xpose.msra.mxu1 %v130_v15 }
  0x3f   :  { %164 = vmatpush.xpose.msra.mxu0 %v129_v16 }
  0x40   :  { %212 = vmatpush.xpose.msra.mxu1 %v129_v16 }
  0x43   :  { %165 = vmatpush.xpose.msra.mxu0 %v128_v17 }
  0x44   :  { %213 = vmatpush.xpose.msra.mxu1 %v128_v17 }
  0x47   :  { %166 = vmatpush.xpose.msra.mxu0 %v127_v18 }
  0x48   :  { %214 = vmatpush.xpose.msra.mxu1 %v127_v18 }
  0x4b   :  { %167 = vmatpush.xpose.msra.mxu0 %v126_v20 }
  0x4c   :  { %215 = vmatpush.xpose.msra.mxu1 %v126_v20 }
  0x82   :  { %v69_v19 = vpop.xlane.xlu0 %68 }
  0x83   :  { %v78_v21 = vmul.f32 0.03125, %v69_v19 }
  0x84   :  { %v75_v22 = vpop.xlane.xlu1 %74 }
  0x85   :  { %v82_v23 = vmul.f32 %v78_v21, %v78_v21  ;;  %v80_v24 = vmul.f32 0.03125, %v75_v22  ;;  %v88_v43 = vsub.f32 %v382_v0, %v78_v21 }
  0x87   :  { %v84_v25 = vsub.f32 %v80_v24, %v82_v23 }
  0x89   :  { %v86_v26 = vmax.f32 %v84_v25, 0.0 }
  0x8a   :  { %v71_v27 = vpop.xlane.xlu0 %70 }
  0x8b   :  { %v90_v28 = vadd.f32 1e-05, %v86_v26  ;;  %v79_v29 = vmul.f32 0.03125, %v71_v27 }
  0x8c   :  { %v77_v30 = vpop.xlane.xlu1 %76 }
  0x8d   :  { %225 = vrsqrt.f32 %v90_v28  ;;  %v83_v31 = vmul.f32 %v79_v29, %v79_v29  ;;  %v81_v32 = vmul.f32 0.03125, %v77_v30  ;;  %vm98_vm1 = vweird.f32 %v90_v28 }
  0x8e   :  { %v89_v55 = vsub.f32 %v387_v4, %v79_v29 }
  0x8f   :  { %v85_v33 = vsub.f32 %v81_v32, %v83_v31 }
  0x91   :  { %v87_v34 = vmax.f32 %v85_v33, 0.0 }
  0x93   :  { %v226_v35 = vpop.eup %225  ;;  %v91_v37 = vadd.f32 1e-05, %v87_v34 }
  0x94   :  { %v93_v36 = vmul.f32 %v226_v35, %v90_v28  ;;  %vm99_vm0 = vweird.f32 %v226_v35 }
  0x95   :  { %227 = vrsqrt.f32 %v91_v37  ;;  %vm100_vm2 = vmor %vm98_vm1, %vm99_vm0  ;;  %vm108_vm4 = vweird.f32 %v91_v37 }
  0x96   :  { %v94_v38 = vmul.f32 %v226_v35, %v93_v36 }
  0x98   :  { %v95_v39 = vmul.f32 0.5, %v94_v38 }
  0x9a   :  { %v96_v40 = vsub.f32 1.5, %v95_v39 }
  0x9b   :  { %v228_v41 = vpop.eup %227 }
  0x9c   :  { %v97_v42 = vmul.f32 %v226_v35, %v96_v40  ;;  %v103_v44 = vmul.f32 %v228_v41, %v91_v37  ;;  %vm109_vm3 = vweird.f32 %v228_v41 }
  0x9d   :  { %vm110_vm5 = vmor %vm108_vm4, %vm109_vm3 }
  0x9e   :  { %v101_v46 = vsel %vm100_vm2, %v226_v35, %v97_v42  ;;  %v104_v47 = vmul.f32 %v228_v41, %v103_v44 }
  0x9f   :  { %v112_v48 = vmul.f32 %v101_v46, %v88_v43 }
  0xa0   :  { %v105_v50 = vmul.f32 0.5, %v104_v47 }
  0xa1   :  { %v118_v51 = vmul.f32 %v222_v45, %v112_v48 }
  0xa2   :  { %v106_v52 = vsub.f32 1.5, %v105_v50 }
  0xa3   :  { %v124_v53 = vadd.f32 %v223_v49, %v118_v51 }
  0xa4   :  { %v107_v54 = vmul.f32 %v228_v41, %v106_v52 }
  0xa5   :  { %168 = vmatmul.f32.vlgmr.msra.gmra.mxu0 %v124_v53 }
  0xa6   :  { %v111_v56 = vsel %vm110_vm5, %v228_v41, %v107_v54 }
  0xa7   :  { %v113_v57 = vmul.f32 %v111_v56, %v89_v55 }
  0xa9   :  { %v119_v58 = vmul.f32 %v222_v45, %v113_v57 }
  0xab   :  { %v125_v59 = vadd.f32 %v223_v49, %v119_v58 }
  0xad   :  { %171 = vmatmul.f32.vlgmr.msra.gmra.mxu1 %v125_v59 }
 0x122   :  { %v169_v61 = vpop.f32.mrf.mxu0 }
 0x123   :  { %v170_v62 = vadd.f32 %v224_v60, %v169_v61 }
 0x125   :  { %v175_v63 = vadd.f32 %v170_v62, %v382_v0 }
 0x127   :  { %177 = vst [vmem:[#allocation8] sm:$0xff] %v175_v63 }
 0x12a   :  { %v172_v1 = vpop.f32.mrf.mxu1 }
 0x12b   :  { %v173_v2 = vadd.f32 %v224_v60, %v172_v1 }
 0x12d   :  { %v176_v3 = vadd.f32 %v173_v2, %v387_v4 }
 0x12f   :  { %178 = vst [vmem:[#allocation8 + $0x8] sm:$0xff] %v176_v3 }
 0x130   :  { %191 = dma.vmem_to_hbm [thread:$0]  %s184_s11, 256, %s186_s14, [#allocation4], %s333_s28, %s333_s28, %s334_s29  }
 0x131   :  { %329 = dma.done.wait [#allocation4], 256  }
 0x132   :  { %330 = vsyncadd [#allocation4], 4294967040 }
 0x133   :  { %196 = vsyncpa [#allocation3], 1 }
 0x134   :  { %197 = vsyncpa [#allocation6], 1 }
 0x135   :  { %198 = vsyncpa [#allocation4], 1 }

</bundles_post_ra>
